<compile_context>
chip_gen: v5e
topology: v5e:2x2
jax: 0.10.0
libtpu: 0.0.40
codegen_flags: <defaults>
</compile_context>

<pallas_src>
import jax
import jax.numpy as jnp
import numpy as np
from jax.experimental import pallas as pl
from jax.experimental.pallas import tpu as pltpu

IN_FEATURES = 4
HIDDEN = 64
PAD = 128  # lane-dense padding for the hidden dim


def dqn_mlp_kernel(x_ref, w1_ref, w2_ref, w3r_ref, b_ref, o_ref):
    """Fused 3-layer MLP on one (TB, 4) batch tile.

    x_ref   : (TB, 4)     compute dtype (f32 or bf16)
    w1_ref  : (4, 128)    layer-1 weight, cols 64..127 zero
    w2_ref  : (128, 128)  layer-2 weight, zero padded
    w3r_ref : (1, 128)    layer-3 weight as a row (w3^T), cols 64..127 zero
    b_ref   : (3, 128)    f32 biases; row 0/1 = layer-1/2 bias, b[2,0] = layer-3 bias
    o_ref   : (1, TB)     f32 output row, Q-value for batch element j in lane j
    """
    cdt = w1_ref.dtype
    x = x_ref[...]                                                     # (TB, 4)
    b = b_ref[...]                                                     # (3, 128) f32

    h = jnp.dot(x, w1_ref[...], preferred_element_type=jnp.float32) + b[0:1, :]
    h = jnp.maximum(h, 0.0).astype(cdt)                                # ReLU, (TB, 128)

    h = jnp.dot(h, w2_ref[...], preferred_element_type=jnp.float32) + b[1:2, :]
    h = jnp.maximum(h, 0.0).astype(cdt)                                # ReLU, (TB, 128)

    # Final layer computed as w3_row @ h^T -> (1, TB): the stored tile is
    # lane-dense with the batch along lanes (no 128x zero-padded writeback).
    q = jax.lax.dot_general(w3r_ref[...], h,
                            dimension_numbers=(((1,), (1,)), ((), ())),
                            preferred_element_type=jnp.float32)        # (1, TB)
    o_ref[...] = (q + b[2:3, 0:1]).astype(o_ref.dtype)


def pack_params(p, dtype=jnp.float32):
    """Pad the 6 raw parameters into lane-dense refs (weights cast, biases f32)."""
    w1p = jnp.zeros((IN_FEATURES, PAD), dtype).at[:, :HIDDEN].set(p["w1"].astype(dtype))
    w2p = jnp.zeros((PAD, PAD), dtype).at[:HIDDEN, :HIDDEN].set(p["w2"].astype(dtype))
    w3r = jnp.zeros((1, PAD), dtype).at[0, :HIDDEN].set(p["w3"][:, 0].astype(dtype))
    bp = (jnp.zeros((3, PAD), jnp.float32)
          .at[0, :HIDDEN].set(p["b1"])
          .at[1, :HIDDEN].set(p["b2"])
          .at[2, 0].set(p["b3"][0]))
    return w1p, w2p, w3r, bp


def _round_up(v, m):
    return ((v + m - 1) // m) * m


def dqn_forward(x, params, *, block_b=512, compute_dtype=None):
    """x: (B, 4); params: raw dict of w1,b1,w2,b2,w3,b3.  Returns (B, 1) f32."""
    B = x.shape[0]
    cdt = x.dtype if compute_dtype is None else compute_dtype
    w1p, w2p, w3r, bp = pack_params(params, cdt)   # in real training: pack once, reuse
    x = x.astype(cdt)

    # Batch tile: single tile for small batches; multiple of 128 when tiled so
    # the (1, TB) output stores stay unmasked / lane-dense.
    if B <= block_b:
        tb = _round_up(B, 8)
    else:
        tb = _round_up(int(block_b), 128)
    Bp = _round_up(B, tb)
    if Bp != B:
        x = jnp.pad(x, ((0, Bp - B), (0, 0)))

    itemsize = jnp.dtype(cdt).itemsize
    cost = pl.CostEstimate(
        flops=2 * Bp * (IN_FEATURES * HIDDEN + HIDDEN * HIDDEN + HIDDEN * 1),
        transcendentals=0,
        bytes_accessed=(Bp * IN_FEATURES * itemsize                    # x in
                        + Bp * 4                                       # (1, Bp) f32 out
                        + (w1p.size + w2p.size + w3r.size) * itemsize  # weights
                        + bp.size * 4),                                # biases
    )

    out = pl.pallas_call(
        dqn_mlp_kernel,
        out_shape=jax.ShapeDtypeStruct((1, Bp), jnp.float32),
        grid=(Bp // tb,),
        in_specs=[
            pl.BlockSpec((tb, IN_FEATURES), lambda i: (i, 0)),     # x: streamed per tile
            pl.BlockSpec((IN_FEATURES, PAD), lambda i: (0, 0)),    # w1: VMEM resident
            pl.BlockSpec((PAD, PAD), lambda i: (0, 0)),            # w2: VMEM resident
            pl.BlockSpec((1, PAD), lambda i: (0, 0)),              # w3 row: VMEM resident
            pl.BlockSpec((3, PAD), lambda i: (0, 0)),              # biases: VMEM resident
        ],
        out_specs=pl.BlockSpec((1, tb), lambda i: (0, i)),         # lane-dense output row
        compiler_params=pltpu.CompilerParams(
            dimension_semantics=("parallel",)),                    # 2-TC shard on v7x
        cost_estimate=cost,
    )(x, w1p, w2p, w3r, bp)

    return out[0, :B].reshape(B, 1)


def xavier_uniform(key, fan_in, fan_out, dtype=jnp.float32):
    # Matches torch.nn.init.xavier_uniform_ (gain=1.0); stored (in, out).
    limit = float(np.sqrt(6.0 / (fan_in + fan_out)))
    return jax.random.uniform(key, (fan_in, fan_out), dtype, -limit, limit)


def make_params(key):
    k1, k2, k3 = jax.random.split(key, 3)
    return {
        "w1": xavier_uniform(k1, IN_FEATURES, HIDDEN),
        "b1": jnp.zeros((HIDDEN,), jnp.float32),   # nn.init.constant_(bias, 0)
        "w2": xavier_uniform(k2, HIDDEN, HIDDEN),
        "b2": jnp.zeros((HIDDEN,), jnp.float32),
        "w3": xavier_uniform(k3, HIDDEN, 1),
        "b3": jnp.zeros((1,), jnp.float32),
    }


def reference_forward(x, p):
    h1 = jnp.maximum(x @ p["w1"] + p["b1"], 0.0)
    h2 = jnp.maximum(h1 @ p["w2"] + p["b2"], 0.0)
    return h2 @ p["w3"] + p["b3"]


if __name__ == "__main__":
    key = jax.random.PRNGKey(0)
    kx, kx2, kp = jax.random.split(key, 3)
    params = make_params(kp)

    # 1) Small-batch f32 correctness check (single grid step, tight tolerance).
    B = 8
    x = jax.random.normal(kx, (B, IN_FEATURES), jnp.float32)
    out = jax.block_until_ready(dqn_forward(x, params))
    ref = reference_forward(x, params)
    assert out.shape == (B, 1), out.shape
    np.testing.assert_allclose(np.asarray(out), np.asarray(ref), rtol=1e-5, atol=1e-5)

    # 2) Larger ragged batch: exercises the batch grid (TB=512, 2 steps, padding)
    #    and the bf16 fast path (native MXU dtype on v6e/v7x; f32 accumulation).
    B2 = 1000
    x2 = jax.random.normal(kx2, (B2, IN_FEATURES), jnp.float32)
    out2 = jax.block_until_ready(
        dqn_forward(x2, params, block_b=512, compute_dtype=jnp.bfloat16))
    ref2 = reference_forward(x2, params)
    assert out2.shape == (B2, 1), out2.shape
    np.testing.assert_allclose(np.asarray(out2), np.asarray(ref2), rtol=5e-2, atol=5e-2)

    print("KERNEL_OK")
</pallas_src>

<mosaic_0001>
module attributes {stable_mosaic.version = 11 : i64} {
  func.func @dqn_mlp_kernel(%arg0: i32, %arg1: memref<8x4xf32, #tpu.memory_space<vmem>>, %arg2: memref<4x128xf32, #tpu.memory_space<vmem>>, %arg3: memref<128x128xf32, #tpu.memory_space<vmem>>, %arg4: memref<1x128xf32, #tpu.memory_space<vmem>>, %arg5: memref<3x128xf32, #tpu.memory_space<vmem>>, %arg6: memref<1x8xf32, #tpu.memory_space<vmem>>) attributes {dimension_semantics = [#tpu.dimension_semantics<parallel>], iteration_bounds = array<i64: 1>, scalar_prefetch = 0 : i64, scratch_operands = 0 : i64, tpu.core_type = #tpu.core_type<tc>, window_params = [{transform_indices = @transform_0, window_bounds = array<i64: 8, 4>}, {pipeline_mode = #tpu.pipeline_mode<synchronous>, transform_indices = @transform_1, window_bounds = array<i64: 4, 128>}, {pipeline_mode = #tpu.pipeline_mode<synchronous>, transform_indices = @transform_2, window_bounds = array<i64: 128, 128>}, {pipeline_mode = #tpu.pipeline_mode<synchronous>, transform_indices = @transform_3, window_bounds = array<i64: 1, 128>}, {pipeline_mode = #tpu.pipeline_mode<synchronous>, transform_indices = @transform_4, window_bounds = array<i64: 3, 128>}, {transform_indices = @transform_5, window_bounds = array<i64: 1, 8>}]} {
    %c0 = arith.constant 0 : index
    %c0_0 = arith.constant 0 : index
    %0 = vector.load %arg1[%c0, %c0_0] : memref<8x4xf32, #tpu.memory_space<vmem>>, vector<8x4xf32>
    %c0_1 = arith.constant 0 : index
    %c0_2 = arith.constant 0 : index
    %1 = vector.load %arg5[%c0_1, %c0_2] : memref<3x128xf32, #tpu.memory_space<vmem>>, vector<3x128xf32>
    %c0_3 = arith.constant 0 : index
    %c0_4 = arith.constant 0 : index
    %2 = vector.load %arg2[%c0_3, %c0_4] : memref<4x128xf32, #tpu.memory_space<vmem>>, vector<4x128xf32>
    %cst = arith.constant dense<0.000000e+00> : vector<8x128xf32>
    %3 = tpu.matmul %0, %2, %cst {dimension_numbers = #tpu.dot_dimension_numbers<[1], [0], [0], [1], [0, 0, 1, 1], [], []>} : vector<8x4xf32>, vector<4x128xf32>, vector<8x128xf32> -> vector<8x128xf32>
    %4 = vector.extract_strided_slice %1 {offsets = [0, 0], sizes = [1, 128], strides = [1, 1]} : vector<3x128xf32> to vector<1x128xf32>
    %5 = vector.broadcast %4 : vector<1x128xf32> to vector<8x128xf32>
    %6 = arith.addf %3, %5 : vector<8x128xf32>
    %cst_5 = arith.constant 0.000000e+00 : f32
    %7 = vector.broadcast %cst_5 : f32 to vector<8x128xf32>
    %8 = arith.maximumf %6, %7 : vector<8x128xf32>
    %c0_6 = arith.constant 0 : index
    %c0_7 = arith.constant 0 : index
    %9 = vector.load %arg3[%c0_6, %c0_7] : memref<128x128xf32, #tpu.memory_space<vmem>>, vector<128x128xf32>
    %cst_8 = arith.constant dense<0.000000e+00> : vector<8x128xf32>
    %10 = tpu.matmul %8, %9, %cst_8 {dimension_numbers = #tpu.dot_dimension_numbers<[1], [0], [0], [1], [0, 0, 1, 1], [], []>} : vector<8x128xf32>, vector<128x128xf32>, vector<8x128xf32> -> vector<8x128xf32>
    %11 = vector.extract_strided_slice %1 {offsets = [1, 0], sizes = [1, 128], strides = [1, 1]} : vector<3x128xf32> to vector<1x128xf32>
    %12 = vector.broadcast %11 : vector<1x128xf32> to vector<8x128xf32>
    %13 = arith.addf %10, %12 : vector<8x128xf32>
    %cst_9 = arith.constant 0.000000e+00 : f32
    %14 = vector.broadcast %cst_9 : f32 to vector<8x128xf32>
    %15 = arith.maximumf %13, %14 : vector<8x128xf32>
    %c0_10 = arith.constant 0 : index
    %c0_11 = arith.constant 0 : index
    %16 = vector.load %arg4[%c0_10, %c0_11] : memref<1x128xf32, #tpu.memory_space<vmem>>, vector<1x128xf32>
    %cst_12 = arith.constant dense<0.000000e+00> : vector<1x8xf32>
    %17 = tpu.matmul %16, %15, %cst_12 {dimension_numbers = #tpu.dot_dimension_numbers<[1], [1], [0], [0], [0, 0, 1, 0], [], []>} : vector<1x128xf32>, vector<8x128xf32>, vector<1x8xf32> -> vector<1x8xf32>
    %18 = vector.extract_strided_slice %1 {offsets = [2, 0], sizes = [1, 1], strides = [1, 1]} : vector<3x128xf32> to vector<1x1xf32>
    %19 = vector.broadcast %18 : vector<1x1xf32> to vector<1x8xf32>
    %20 = arith.addf %17, %19 : vector<1x8xf32>
    %c0_13 = arith.constant 0 : index
    %c0_14 = arith.constant 0 : index
    %21 = vector.load %arg6[%c0_13, %c0_14] : memref<1x8xf32, #tpu.memory_space<vmem>>, vector<1x8xf32>
    tpu.vector_store %arg6[%c0_13, %c0_14], %20 {strides = array<i32>} : memref<1x8xf32, #tpu.memory_space<vmem>>, vector<1x8xf32>,
    return
  }
  func.func @transform_0(%arg0: i32) -> (i32, i32) {
    %c0_i32 = arith.constant 0 : i32
    %c0_i32_0 = arith.constant 0 : i32
    return %arg0, %c0_i32 : i32, i32
  }
  func.func @transform_1(%arg0: i32) -> (i32, i32) {
    %c0_i32 = arith.constant 0 : i32
    %c0_i32_0 = arith.constant 0 : i32
    %c0_i32_1 = arith.constant 0 : i32
    return %c0_i32, %c0_i32_0 : i32, i32
  }
  func.func @transform_2(%arg0: i32) -> (i32, i32) {
    %c0_i32 = arith.constant 0 : i32
    %c0_i32_0 = arith.constant 0 : i32
    %c0_i32_1 = arith.constant 0 : i32
    return %c0_i32, %c0_i32_0 : i32, i32
  }
  func.func @transform_3(%arg0: i32) -> (i32, i32) {
    %c0_i32 = arith.constant 0 : i32
    %c0_i32_0 = arith.constant 0 : i32
    %c0_i32_1 = arith.constant 0 : i32
    return %c0_i32, %c0_i32_0 : i32, i32
  }
  func.func @transform_4(%arg0: i32) -> (i32, i32) {
    %c0_i32 = arith.constant 0 : i32
    %c0_i32_0 = arith.constant 0 : i32
    %c0_i32_1 = arith.constant 0 : i32
    return %c0_i32, %c0_i32_0 : i32, i32
  }
  func.func @transform_5(%arg0: i32) -> (i32, i32) {
    %c0_i32 = arith.constant 0 : i32
    %c0_i32_0 = arith.constant 0 : i32
    return %c0_i32, %arg0 : i32, i32
  }
}

</mosaic_0001>

<bundles_post_ra>
// kernel: tpu_custom_call.1
= control target key start
LH: loop header
LB: loop body
LE: loop exit
PB: predicated region body
PF: predicated region fallthrough
CT: control target
= control target key end

     0   :  { %10 = vsyncpa [#allocation3], 0  ;;  %s267_s0 = inlined_call_operand.vmem [shape: f32[8,4], index: 0, kind: input, shape index: {}]   ;;  %s268_s1 = inlined_call_operand.vmem [shape: f32[4,128], index: 1, kind: input, shape index: {}]   ;;  %s269_s2 = inlined_call_operand.hbm [shape: f32[128,128], index: 2, kind: input, shape index: {}]   ;;  %s270_s3 = inlined_call_operand.vmem [shape: f32[1,128], index: 3, kind: input, shape index: {}]   ;;  %s271_s4 = inlined_call_operand.vmem [shape: f32[3,128], index: 4, kind: input, shape index: {}]   ;;  %s272_s5 = inlined_call_operand.hbm [shape: f32[1,8], index: 5, kind: output, shape index: {}]  }
   0x1   :  { %11 = vsyncpa [#allocation4], 0  ;;  %s20_s20 = sshll.u32 %s269_s2, 4  ;;  %s214_s21 = smov [#allocation2]   ;;  %s21_s20 = int_to_ptr.hbm [resolvable:$true] %s20_s20 }
   0x2   :  { %s22_s22 = sshll.u32 %s214_s21, 4  ;;  %s215_s23 = smov 128   ;;  %s23_s22 = int_to_ptr.vmem [resolvable:$true] %s22_s22 }
   0x3   :  { %s216_s24 = smov 8  }
   0x4   :  { %28 = dma.hbm_to_vmem [thread:$0]  %s21_s20, 2048, %s23_s22, [#allocation3], %s215_s23, %s215_s23, %s216_s24  }
   0x5   :  { %210 = dma.done.wait [#allocation3], 2048  }
   0x6   :  { %211 = vsyncadd [#allocation3], 4294965248  ;;  %vm45_vm0 = vcmask 1043456   ;;  %vm41_vm1 = vcmask 31744   ;;  %v39_v0 = vld [vmem:[%s268_s1] sm:$0xf] }
   0x7   :  { %v37_v1 = vld [vmem:[%s267_s0] sm:$0xff]  ;;  %v85_v2 = vld [vmem:[#allocation2 + $0x78] sm:$0xff]  ;;  %154 = vmatpush.msk.msra.mxu0 %vm45_vm0, %v39_v0  ;;  %v84_v3 = vld [vmem:[#allocation2 + $0x70] sm:$0xff]  ;;  %v217_v23 = vmov 0   ;;  %s144_s8 = sshll.u32 %s272_s5, 4  ;;  %vm135_vm2 = vcmask 57344   ;;  %s145_s8 = int_to_ptr.hbm [resolvable:$true] %s144_s8 }
   0x8   :  { %87 = vmatpush.msra.mxu1 %v85_v2  ;;  %155 = vmatmul.msk.f32.vlgmr.msra.gmra.mxu0 %vm41_vm1, %v37_v1  ;;  %v83_v4 = vld [vmem:[#allocation2 + $0x68] sm:$0xff]  ;;  %v82_v5 = vld [vmem:[#allocation2 + $0x60] sm:$0xff]  ;;  %v81_v6 = vld [vmem:[#allocation2 + $0x58] sm:$0xff] }
   0x9   :  { %v80_v7 = vld [vmem:[#allocation2 + $0x50] sm:$0xff]  ;;  %v79_v8 = vld [vmem:[#allocation2 + $0x48] sm:$0xff]  ;;  %v78_v9 = vld [vmem:[#allocation2 + $0x40] sm:$0xff]  ;;  %161 = vset.pattern.permute.xlu0 %v217_v23 }
   0xa   :  { %88 = vmatpush.msra.mxu1 %v84_v3  ;;  %v77_v10 = vld [vmem:[#allocation2 + $0x38] sm:$0xff]  ;;  %v76_v11 = vld [vmem:[#allocation2 + $0x30] sm:$0xff]  ;;  %v75_v12 = vld [vmem:[#allocation2 + $0x28] sm:$0xff] }
   0xb   :  { %v74_v13 = vld [vmem:[#allocation2 + $0x20] sm:$0xff]  ;;  %v73_v14 = vld [vmem:[#allocation2 + $0x18] sm:$0xff]  ;;  %v72_v15 = vld [vmem:[#allocation2 + $0x10] sm:$0xff] }
   0xc   :  { %89 = vmatpush.msra.mxu1 %v83_v4  ;;  %v71_v16 = vld [vmem:[#allocation2 + $0x8] sm:$0xff]  ;;  %v70_v17 = vld [vmem:[#allocation2] sm:$0xff] }
   0xd   :  { %v38_v18 = vld [vmem:[%s271_s4] sm:$0x7]  ;;  %s218_s4 = smov [#allocation5]  }
   0xe   :  { %90 = vmatpush.msra.mxu1 %v82_v5  ;;  %v40_v19 = vperm.slane %v38_v18, 0  ;;  %111 = vperm.xlu0 %161, %v38_v18   ;;  %v86_v24 = vperm.slane %v38_v18, 1  ;;  %v108_v28 = vld [vmem:[%s270_s3] sm:$0x1]  ;;  %s142_s30 = sshll.u32 %s218_s4, 4  ;;  %s143_s30 = int_to_ptr.vmem [resolvable:$true] %s142_s30 }
  0x10   :  { %91 = vmatpush.msra.mxu1 %v81_v6 }
  0x12   :  { %92 = vmatpush.msra.mxu1 %v80_v7 }
  0x14   :  { %93 = vmatpush.msra.mxu1 %v79_v8 }
  0x16   :  { %94 = vmatpush.msra.mxu1 %v78_v9 }
  0x18   :  { %95 = vmatpush.msra.mxu1 %v77_v10 }
  0x1a   :  { %96 = vmatpush.msra.mxu1 %v76_v11 }
  0x1c   :  { %97 = vmatpush.msra.mxu1 %v75_v12 }
  0x1e   :  { %98 = vmatpush.msra.mxu1 %v74_v13 }
  0x20   :  { %99 = vmatpush.msra.mxu1 %v73_v14 }
  0x22   :  { %100 = vmatpush.msra.mxu1 %v72_v15 }
  0x24   :  { %101 = vmatpush.msra.mxu1 %v71_v16 }
  0x26   :  { %102 = vmatpush.msra.mxu1 %v70_v17 }
  0x80   :  { %v112_v29 = vpop.permute.xlu0 %111 }
  0x81   :  { %v113_v30 = vrot.slane %v112_v29, 2 }
  0x85   :  { %v66_v20 = vpop.f32.mrf.mxu0 }
  0x86   :  { %v67_v21 = vadd.f32 %v66_v20, %v40_v19 }
  0x88   :  { %v69_v22 = vmax.f32 %v67_v21, 0.0 }
  0x8a   :  { %103 = vmatmul.f32.vlgmr.msra.gmra.mxu1 %v69_v22 }
 0x107   :  { %v104_v25 = vpop.f32.mrf.mxu1 }
 0x108   :  { %v105_v26 = vadd.f32 %v104_v25, %v86_v24 }
 0x10a   :  { %v107_v27 = vmax.f32 %v105_v26, 0.0 }
 0x10c   :  { %130 = vmatpush.xpose.msra.mxu2 %v107_v27 }
 0x10f   :  { %131 = vmatmul.f32.vlgmr.msra.gmra.mxu2 %v108_v28 }
 0x192   :  { %v132_v31 = vpop.f32.mrf.mxu2 }
 0x193   :  { %v133_v32 = vadd.f32 %v132_v31, %v113_v30 }
 0x195   :  { %136 = vst.msk [vmem:[#allocation5] sm:$0x1] %vm135_vm2, %v133_v32 }
 0x196   :  { %147 = dma.vmem_to_hbm [thread:$0]  %s143_s30, 16, %s145_s8, [#allocation4]  }
 0x197   :  { %212 = dma.done.wait [#allocation4], 16  }
 0x198   :  { %213 = vsyncadd [#allocation4], 4294967280 }
 0x199   :  { %152 = vsyncpa [#allocation3], 1 }
 0x19a   :  { %153 = vsyncpa [#allocation4], 1 }

</bundles_post_ra>
